<compile_context>
chip_gen: v7x
topology: tpu7x:2x2x1
jax: 0.10.0
libtpu: 0.0.40
codegen_flags: <defaults>
</compile_context>

<pallas_src>
import functools

import jax
import jax.numpy as jnp
import numpy as np
from jax.experimental import pallas as pl
from jax.experimental.pallas import tpu as pltpu


# -----------------------------------------------------------------------------
# Kernel: one lane-dense matmul tile + bias (+ ReLU).
#   x_ref: (TM, V*Cin)   w_ref: (V*Cin, V*Cout)   b_ref: (1, V*Cout)
#   o_ref: (TM, V*Cout)  -- full-width lane-dense store.
# -----------------------------------------------------------------------------
def _fused_matmul_kernel(x_ref, w_ref, b_ref, o_ref, *, apply_relu):
    acc = jnp.dot(x_ref[...], w_ref[...], preferred_element_type=jnp.float32)
    acc = acc + b_ref[...].astype(jnp.float32)
    if apply_relu:
        acc = jnp.maximum(acc, 0.0)
    o_ref[...] = acc.astype(o_ref.dtype)


# -----------------------------------------------------------------------------
# One-time probe: does this JAX honour pipeline_mode=pl.Buffered(1) for a
# resident (constant index_map) operand of a grid pallas_call?  Checks both
# lowering and numerics; falls back to default double-buffering otherwise.
# -----------------------------------------------------------------------------
_SINGLE_BUFFER_OK = None


def _single_buffer_supported():
    global _SINGLE_BUFFER_OK
    if _SINGLE_BUFFER_OK is not None:
        return _SINGLE_BUFFER_OK
    try:
        def _probe(x_ref, w_ref, o_ref):
            o_ref[...] = x_ref[...] * w_ref[...]

        x = jnp.arange(16 * 128, dtype=jnp.float32).reshape(16, 128)
        w = jnp.full((1, 128), 2.0, jnp.float32)
        out = pl.pallas_call(
            _probe,
            out_shape=jax.ShapeDtypeStruct((16, 128), jnp.float32),
            grid=(2,),
            in_specs=[
                pl.BlockSpec((8, 128), lambda i: (i, 0)),
                pl.BlockSpec((1, 128), lambda i: (0, 0),
                             pipeline_mode=pl.Buffered(1)),
            ],
            out_specs=pl.BlockSpec((8, 128), lambda i: (i, 0)),
        )(x, w)
        _SINGLE_BUFFER_OK = bool(jnp.allclose(out, x * 2.0))
    except Exception:
        _SINGLE_BUFFER_OK = False
    return _SINGLE_BUFFER_OK


def _round_up(a, b):
    return ((a + b - 1) // b) * b


def _choose_tm(m, tm_hint, sublane):
    """MXU-aligned (256) M-tile when there is enough work, otherwise just
    sublane-aligned; keep >= 2 grid steps when M allows so the "parallel"
    axis can feed both v7x TensorCores."""
    align = 256 if m >= 2 * 256 else sublane
    m_al = _round_up(m, align)
    tm = max(align, min(_round_up(tm_hint, align), m_al))
    if m_al >= 2 * align and pl.cdiv(m, tm) < 2:
        tm = _round_up(pl.cdiv(m_al, 2), align)
    return tm


def _fused_matmul(x2d, w, b, *, apply_relu, out_dtype=None, tm_hint=512):
    """out[m, :] = (relu)(x2d[m, :] @ w + b).   x2d:(M,Kd)  w:(Kd,Nd)  b:(1,Nd)."""
    m, kd = x2d.shape
    nd = w.shape[1]
    out_dtype = x2d.dtype if out_dtype is None else out_dtype

    w_bytes = w.size * w.dtype.itemsize
    if w_bytes > 40 * 1024 * 1024:
        # TODO(synk): large-channel shapes need the two-stage (1x1 conv + per-k
        # graph mix) structure instead of a VMEM-resident fused weight.
        raise NotImplementedError("fused weight too large for VMEM-resident kernel")

    sublane = 16 if x2d.dtype == jnp.bfloat16 else 8
    tm = _choose_tm(m, tm_hint, sublane)
    grid = (pl.cdiv(m, tm),)          # ragged last block: OOB rows never stored

    single_buf = _single_buffer_supported()
    if single_buf:
        w_spec = pl.BlockSpec((kd, nd), lambda i: (0, 0), pipeline_mode=pl.Buffered(1))
        b_spec = pl.BlockSpec((1, nd), lambda i: (0, 0), pipeline_mode=pl.Buffered(1))
    else:
        w_spec = pl.BlockSpec((kd, nd), lambda i: (0, 0))
        b_spec = pl.BlockSpec((1, nd), lambda i: (0, 0))

    out_isz = np.dtype(out_dtype).itemsize
    cost = pl.CostEstimate(
        flops=2 * m * kd * nd,
        bytes_accessed=(x2d.size * x2d.dtype.itemsize + w_bytes
                        + b.size * b.dtype.itemsize + m * nd * out_isz),
        transcendentals=0)

    n_wbuf = 1 if single_buf else 2
    est_vmem = (2 * tm * kd * x2d.dtype.itemsize + 2 * tm * nd * out_isz
                + n_wbuf * (w_bytes + b.size * b.dtype.itemsize))
    cp = dict(dimension_semantics=("parallel",))
    if est_vmem > 24 * 1024 * 1024:
        cp["vmem_limit_bytes"] = min(int(est_vmem * 4 // 3), 96 * 1024 * 1024)

    return pl.pallas_call(
        functools.partial(_fused_matmul_kernel, apply_relu=apply_relu),
        out_shape=jax.ShapeDtypeStruct((m, nd), out_dtype),
        grid=grid,
        in_specs=[pl.BlockSpec((tm, kd), lambda i: (i, 0)), w_spec, b_spec],
        out_specs=pl.BlockSpec((tm, nd), lambda i: (i, 0)),
        compiler_params=pltpu.CompilerParams(**cp),
        cost_estimate=cost,
    )(x2d, w, b)


def fused_block_apply(x_ntvc, w_eff, b_eff, *, apply_relu, out_dtype=None, tm_hint=512):
    """x_ntvc: (N, T, V, C) channels-last -> (N, T, V, Cout) channels-last.
    The lane-dense (M, V*C) slab is a free reshape in this layout."""
    n, t, v, c = x_ntvc.shape
    cout = w_eff.shape[1] // v
    x2d = x_ntvc.reshape(n * t, v * c)
    out2d = _fused_matmul(x2d, w_eff, b_eff, apply_relu=apply_relu,
                          out_dtype=out_dtype, tm_hint=tm_hint)
    return out2d.reshape(n, t, v, cout)


# -----------------------------------------------------------------------------
# One-time parameter fusion (hoist out of the per-forward path).
# -----------------------------------------------------------------------------
def fuse_sgc_params(conv_w, conv_b, A, s_kernel_size, weight_dtype=None):
    """SpatialGraphConv: fold the 1x1 conv (Cin -> K*Cout) and the K-hop graph mix
    into W:(V*Cin, V*Cout), b:(1, V*Cout).  The bias is mixed through sum_v A[k,v,w]
    because SpatialGraphConv applies the conv (and its bias) BEFORE the mix."""
    k = s_kernel_size
    cout = conv_w.shape[0] // k
    cin = conv_w.shape[1]
    v = A.shape[-1]
    hi = jax.lax.Precision.HIGHEST
    w2 = conv_w[:, :, 0, 0].reshape(k, cout, cin).astype(jnp.float32)
    w_big = jnp.einsum('kvw,koi->viwo', A[:k].astype(jnp.float32), w2,
                       precision=hi).reshape(v * cin, v * cout)
    b_big = jnp.einsum('kw,ko->wo', A[:k].sum(axis=1).astype(jnp.float32),
                       conv_b.reshape(k, cout).astype(jnp.float32),
                       precision=hi).reshape(1, v * cout)
    if weight_dtype is not None:
        w_big = w_big.astype(weight_dtype)
    return w_big, b_big            # bias stays f32: it adds into the f32 accumulator


def fuse_aagcn_params(w_d, b_d, A, bn_gamma, bn_beta, bn_mean, bn_var,
                      w_down=None, b_down=None, dn_gamma=None, dn_beta=None,
                      dn_mean=None, dn_var=None, eps=1e-5, weight_dtype=None):
    """Spatial_AAGCN_Block (adaptive=False, eval-mode BN): fold
         relu( BN(sum_i conv_d[i](x @ A[i])) + down(x) )
    into W_eff:(V*Cin, V*Cout), b_eff:(1, V*Cout) so the forward is one matmul+ReLU."""
    k, cout, cin = w_d.shape
    v = A.shape[-1]
    hi = jax.lax.Precision.HIGHEST
    f32 = jnp.float32
    scale = (bn_gamma / jnp.sqrt(bn_var + eps)).astype(f32)            # (Cout,)
    shift = (bn_beta - bn_mean * scale).astype(f32)
    w_main = jnp.einsum('kvw,koi->viwo', A[:k].astype(f32), w_d.astype(f32),
                        precision=hi) * scale[None, None, None, :]     # (V,Cin,V,Cout)
    b_main = scale * b_d.astype(f32).sum(axis=0) + shift               # (Cout,)
    if w_down is not None:
        dscale = (dn_gamma / jnp.sqrt(dn_var + eps)).astype(f32)
        dshift = (dn_beta - dn_mean * dscale).astype(f32)
        w_res = jnp.einsum('vw,oi->viwo', jnp.eye(v, dtype=f32),
                           w_down.astype(f32)) * dscale[None, None, None, :]
        b_res = dscale * b_down.astype(f32) + dshift
    else:
        # identity residual (Cin == Cout), no BN on the skip path
        w_res = jnp.einsum('vw,oi->viwo', jnp.eye(v, dtype=f32),
                           jnp.eye(cout, dtype=f32))
        b_res = jnp.zeros((cout,), f32)
    w_eff = (w_main + w_res).reshape(v * cin, v * cout)
    b_eff = jnp.tile(b_main + b_res, (v,)).reshape(1, v * cout)
    if weight_dtype is not None:
        w_eff = w_eff.astype(weight_dtype)
    return w_eff, b_eff


# -----------------------------------------------------------------------------
# Pure-JAX references (PyTorch-faithful) for correctness checks.
# -----------------------------------------------------------------------------
def sgc_reference(x_nctv, conv_w, conv_b, A, s_kernel_size):
    n, cin, t, v = x_nctv.shape
    k = s_kernel_size
    cout = conv_w.shape[0] // k
    hi = jax.lax.Precision.HIGHEST
    y = jnp.einsum('oc,nctv->notv', conv_w[:, :, 0, 0], x_nctv, precision=hi)
    y = y + conv_b[None, :, None, None]
    y = y.reshape(n, k, cout, t, v)
    return jnp.einsum('nkctv,kvw->nctw', y, A[:k], precision=hi)


def aagcn_reference(x_nctv, w_d, b_d, A, bn, down=None, eps=1e-5):
    """Spatial_AAGCN_Block.forward with adaptive=False, attention=False, eval BN."""
    n, c, t, v = x_nctv.shape
    k = w_d.shape[0]
    hi = jax.lax.Precision.HIGHEST
    x_mat = x_nctv.reshape(n, c * t, v)
    y = None
    for i in range(k):
        z = jnp.matmul(x_mat, A[i], precision=hi).reshape(n, c, t, v)
        z = jnp.einsum('oc,nctv->notv', w_d[i], z, precision=hi)
        z = z + b_d[i][None, :, None, None]
        y = z if y is None else y + z
    gamma, beta, mean, var = bn
    y = ((y - mean[None, :, None, None])
         * (gamma / jnp.sqrt(var + eps))[None, :, None, None]
         + beta[None, :, None, None])
    if down is None:
        res = x_nctv
    else:
        wdn, bdn, dgamma, dbeta, dmean, dvar = down
        res = jnp.einsum('oc,nctv->notv', wdn, x_nctv, precision=hi)
        res = res + bdn[None, :, None, None]
        res = ((res - dmean[None, :, None, None])
               * (dgamma / jnp.sqrt(dvar + eps))[None, :, None, None]
               + dbeta[None, :, None, None])
    return jnp.maximum(y + res, 0.0)


if __name__ == "__main__":
    # Small shapes consistent with the module: x is (N, C, T, V)
    N, Cin, T, V = 2, 4, 16, 16
    Cout = 8
    max_graph_distance = 2
    K = max_graph_distance + 1

    key = jax.random.PRNGKey(0)
    ks = jax.random.split(key, 16)

    x = jax.random.normal(ks[0], (N, Cin, T, V), jnp.float32)
    A = 0.5 * jax.random.normal(ks[1], (K, V, V), jnp.float32)

    # SpatialGraphConv parameters (one Conv2d(Cin, K*Cout, 1))
    conv_w = 0.1 * jax.random.normal(ks[2], (K * Cout, Cin, 1, 1), jnp.float32)
    conv_b = 0.1 * jax.random.normal(ks[3], (K * Cout,), jnp.float32)

    # Spatial_AAGCN_Block parameters (adaptive=False): K conv_d, BN, down(conv+BN)
    w_d = 0.1 * jax.random.normal(ks[4], (K, Cout, Cin), jnp.float32)
    b_d = 0.1 * jax.random.normal(ks[5], (K, Cout), jnp.float32)
    bn_gamma = 1.0 + 0.1 * jax.random.normal(ks[6], (Cout,), jnp.float32)
    bn_beta = 0.1 * jax.random.normal(ks[7], (Cout,), jnp.float32)
    bn_mean = 0.1 * jax.random.normal(ks[8], (Cout,), jnp.float32)
    bn_var = 0.5 + jnp.abs(jax.random.normal(ks[9], (Cout,), jnp.float32))
    w_down = 0.1 * jax.random.normal(ks[10], (Cout, Cin), jnp.float32)
    b_down = 0.1 * jax.random.normal(ks[11], (Cout,), jnp.float32)
    dn_gamma = 1.0 + 0.1 * jax.random.normal(ks[12], (Cout,), jnp.float32)
    dn_beta = 0.1 * jax.random.normal(ks[13], (Cout,), jnp.float32)
    dn_mean = 0.1 * jax.random.normal(ks[14], (Cout,), jnp.float32)
    dn_var = 0.5 + jnp.abs(jax.random.normal(ks[15], (Cout,), jnp.float32))

    _single_buffer_supported()          # run the probe once, outside any jit

    # ---- one-time parameter fusion (hoisted off the per-forward path) -------
    w_sgc, b_sgc = fuse_sgc_params(conv_w, conv_b, A, K)
    w_blk, b_blk = fuse_aagcn_params(w_d, b_d, A, bn_gamma, bn_beta, bn_mean,
                                     bn_var, w_down, b_down, dn_gamma, dn_beta,
                                     dn_mean, dn_var)

    # Channels-last activations; in a channels-last model this transpose vanishes.
    x_ntvc = jnp.transpose(x, (0, 2, 3, 1))

    run_sgc = jax.jit(functools.partial(fused_block_apply, apply_relu=False))
    run_blk = jax.jit(functools.partial(fused_block_apply, apply_relu=True))

    out_sgc = jax.block_until_ready(run_sgc(x_ntvc, w_sgc, b_sgc))
    out_blk = jax.block_until_ready(run_blk(x_ntvc, w_blk, b_blk))

    # bf16 feeds (f32 accumulation in-kernel): halves HBM traffic, bf16-native MXU.
    out_bf16 = jax.block_until_ready(
        run_blk(x_ntvc.astype(jnp.bfloat16), w_blk.astype(jnp.bfloat16), b_blk))

    # ---- checks against PyTorch-faithful references -------------------------
    ref_sgc = sgc_reference(x, conv_w, conv_b, A, K)
    ref_blk = aagcn_reference(x, w_d, b_d, A,
                              (bn_gamma, bn_beta, bn_mean, bn_var),
                              (w_down, b_down, dn_gamma, dn_beta, dn_mean, dn_var))

    out_sgc_nctv = jnp.transpose(out_sgc, (0, 3, 1, 2))
    out_blk_nctv = jnp.transpose(out_blk, (0, 3, 1, 2))
    out_b16_nctv = jnp.transpose(out_bf16.astype(jnp.float32), (0, 3, 1, 2))

    assert out_sgc_nctv.shape == (N, Cout, T, V), out_sgc_nctv.shape
    assert out_blk_nctv.shape == (N, Cout, T, V), out_blk_nctv.shape

    e1 = float(jnp.max(jnp.abs(out_sgc_nctv - ref_sgc)))
    e2 = float(jnp.max(jnp.abs(out_blk_nctv - ref_blk)))
    e3 = float(jnp.max(jnp.abs(out_b16_nctv - ref_blk)))
    assert e1 < 3e-2, ("spatial_graph_conv mismatch", e1)
    assert e2 < 3e-2, ("aagcn_block mismatch", e2)
    assert e3 < 2e-1, ("aagcn_block bf16 mismatch", e3)

    print("KERNEL_OK")
</pallas_src>

<mosaic_0001>
module attributes {stable_mosaic.version = 11 : i64} {
  func.func @_probe(%arg0: i32, %arg1: memref<8x128xf32, #tpu.memory_space<vmem>>, %arg2: memref<1x128xf32, #tpu.memory_space<vmem>>, %arg3: memref<8x128xf32, #tpu.memory_space<vmem>>) attributes {dimension_semantics = [#tpu.dimension_semantics<arbitrary>], iteration_bounds = array<i64: 2>, scalar_prefetch = 0 : i64, scratch_operands = 0 : i64, tpu.core_type = #tpu.core_type<tc>, window_params = [{transform_indices = @transform_0, window_bounds = array<i64: 8, 128>}, {pipeline_mode = #tpu.pipeline_mode<synchronous>, transform_indices = @transform_1, window_bounds = array<i64: 1, 128>}, {transform_indices = @transform_2, window_bounds = array<i64: 8, 128>}]} {
    %c0 = arith.constant 0 : index
    %c0_0 = arith.constant 0 : index
    %0 = vector.load %arg1[%c0, %c0_0] : memref<8x128xf32, #tpu.memory_space<vmem>>, vector<8x128xf32>
    %c0_1 = arith.constant 0 : index
    %c0_2 = arith.constant 0 : index
    %1 = vector.load %arg2[%c0_1, %c0_2] : memref<1x128xf32, #tpu.memory_space<vmem>>, vector<1x128xf32>
    %2 = vector.broadcast %1 : vector<1x128xf32> to vector<8x128xf32>
    %3 = arith.mulf %0, %2 : vector<8x128xf32>
    %c0_3 = arith.constant 0 : index
    %c0_4 = arith.constant 0 : index
    %4 = vector.load %arg3[%c0_3, %c0_4] : memref<8x128xf32, #tpu.memory_space<vmem>>, vector<8x128xf32>
    tpu.vector_store %arg3[%c0_3, %c0_4], %3 {strides = array<i32>} : memref<8x128xf32, #tpu.memory_space<vmem>>, vector<8x128xf32>,
    return
  }
  func.func @transform_0(%arg0: i32) -> (i32, i32) {
    %c0_i32 = arith.constant 0 : i32
    %c0_i32_0 = arith.constant 0 : i32
    return %arg0, %c0_i32 : i32, i32
  }
  func.func @transform_1(%arg0: i32) -> (i32, i32) {
    %c0_i32 = arith.constant 0 : i32
    %c0_i32_0 = arith.constant 0 : i32
    %c0_i32_1 = arith.constant 0 : i32
    return %c0_i32, %c0_i32_0 : i32, i32
  }
  func.func @transform_2(%arg0: i32) -> (i32, i32) {
    %c0_i32 = arith.constant 0 : i32
    %c0_i32_0 = arith.constant 0 : i32
    return %arg0, %c0_i32 : i32, i32
  }
}

module attributes {stable_mosaic.version = 11 : i64} {
  func.func @_fused_matmul_kernel(%arg0: i32, %arg1: memref<16x64xf32, #tpu.memory_space<vmem>>, %arg2: memref<64x128xf32, #tpu.memory_space<vmem>>, %arg3: memref<1x128xf32, #tpu.memory_space<vmem>>, %arg4: memref<16x128xf32, #tpu.memory_space<vmem>>) attributes {dimension_semantics = [#tpu.dimension_semantics<parallel>], iteration_bounds = array<i64: 2>, scalar_prefetch = 0 : i64, scratch_operands = 0 : i64, tpu.core_type = #tpu.core_type<tc>, window_params = [{transform_indices = @transform_0, window_bounds = array<i64: 16, 64>}, {pipeline_mode = #tpu.pipeline_mode<synchronous>, transform_indices = @transform_1, window_bounds = array<i64: 64, 128>}, {pipeline_mode = #tpu.pipeline_mode<synchronous>, transform_indices = @transform_2, window_bounds = array<i64: 1, 128>}, {transform_indices = @transform_3, window_bounds = array<i64: 16, 128>}]} {
    %c0 = arith.constant 0 : index
    %c0_0 = arith.constant 0 : index
    %0 = vector.load %arg1[%c0, %c0_0] : memref<16x64xf32, #tpu.memory_space<vmem>>, vector<16x64xf32>
    %c0_1 = arith.constant 0 : index
    %c0_2 = arith.constant 0 : index
    %1 = vector.load %arg2[%c0_1, %c0_2] : memref<64x128xf32, #tpu.memory_space<vmem>>, vector<64x128xf32>
    %cst = arith.constant dense<0.000000e+00> : vector<16x128xf32>
    %2 = tpu.matmul %0, %1, %cst {dimension_numbers = #tpu.dot_dimension_numbers<[1], [0], [0], [1], [0, 0, 1, 1], [], []>} : vector<16x64xf32>, vector<64x128xf32>, vector<16x128xf32> -> vector<16x128xf32>
    %c0_3 = arith.constant 0 : index
    %c0_4 = arith.constant 0 : index
    %3 = vector.load %arg3[%c0_3, %c0_4] : memref<1x128xf32, #tpu.memory_space<vmem>>, vector<1x128xf32>
    %4 = vector.broadcast %3 : vector<1x128xf32> to vector<16x128xf32>
    %5 = arith.addf %2, %4 : vector<16x128xf32>
    %c0_5 = arith.constant 0 : index
    %c0_6 = arith.constant 0 : index
    %6 = vector.load %arg4[%c0_5, %c0_6] : memref<16x128xf32, #tpu.memory_space<vmem>>, vector<16x128xf32>
    tpu.vector_store %arg4[%c0_5, %c0_6], %5 {strides = array<i32>} : memref<16x128xf32, #tpu.memory_space<vmem>>, vector<16x128xf32>,
    return
  }
  func.func @transform_0(%arg0: i32) -> (i32, i32) {
    %c0_i32 = arith.constant 0 : i32
    %c0_i32_0 = arith.constant 0 : i32
    return %arg0, %c0_i32 : i32, i32
  }
  func.func @transform_1(%arg0: i32) -> (i32, i32) {
    %c0_i32 = arith.constant 0 : i32
    %c0_i32_0 = arith.constant 0 : i32
    %c0_i32_1 = arith.constant 0 : i32
    return %c0_i32, %c0_i32_0 : i32, i32
  }
  func.func @transform_2(%arg0: i32) -> (i32, i32) {
    %c0_i32 = arith.constant 0 : i32
    %c0_i32_0 = arith.constant 0 : i32
    %c0_i32_1 = arith.constant 0 : i32
    return %c0_i32, %c0_i32_0 : i32, i32
  }
  func.func @transform_3(%arg0: i32) -> (i32, i32) {
    %c0_i32 = arith.constant 0 : i32
    %c0_i32_0 = arith.constant 0 : i32
    return %arg0, %c0_i32 : i32, i32
  }
}

</mosaic_0001>

<bundles_post_ra>
// kernel: tpu_custom_call.1
= control target key start
LH: loop header
LB: loop body
LE: loop exit
PB: predicated region body
PF: predicated region fallthrough
CT: control target
= control target key end

     0   :  { %7 = vsyncpa [#allocation3], 0  ;;  %s591_s0 = inlined_call_operand.hbm [shape: f32[16,128], index: 0, kind: input, shape index: {}]   ;;  %s592_s1 = inlined_call_operand.vmem [shape: f32[1,128], index: 1, kind: input, shape index: {}]   ;;  %s593_s2 = inlined_call_operand.hbm [shape: f32[16,128], index: 2, kind: output, shape index: {}]  }
   0x1   :  { %9 = vsyncpa [#allocation3 + $0x1], 0 }
   0x2   :  { %10 = vsyncpa [#allocation4], 0 }
   0x3   :  { %12 = vsyncpa [#allocation4 + $0x1], 0  ;;  %s427_s9 = smov 0   ;;  %s429_s10 = smov 0  }
   0x4   :  { %s431_s11 = smov 0   ;;  %s433_s12 = smov 0  }
   0x5 LB: > { %s448_s13 = sadd.s32 4294967295, %s408_s12   ;;  %s253_s14 = sadd.s32 4294967294, %s408_s12   ;;  %s408_s12 = sphi %s433_s12, %s608_s12   ;;  %s404_s11 = sphi %s431_s11, %s607_s11   ;;  %s400_s10 = sphi %s429_s10, %s606_s10   ;;  %s396_s9 = sphi %s427_s9, %s605_s9  }
   0x6   : > { %s452_s15 = sadd.s32 1, %s408_s12   ;;  %s25_s16 = sadd.s32 1, %s404_s11 }
   0x7   : > { %s22_s17 = ssub.s32 %s408_s12, %s452_s15  ;;  %p32_p0 = scmp.ne.s32.totalorder %s404_s11, %s400_s10 }
   0x8   : > { %p23_p1 = scmp.eq.s32.totalorder %s22_s17, 0  ;;  %p33_p2 = scmp.eq.s32.totalorder %s408_s12, 0 }
   0x9   : > { %p38_p3 = scmp.ne.s32.totalorder %s400_s10, %s396_s9  ;;  %p39_p4 = scmp.eq.s32.totalorder %s448_s13, 0 }
   0xa   : > { %s464_s18 = scalar_select %p23_p1, %s404_s11, %s25_s16  }
   0xb   : > { %p466_p5 = por %p33_p2, %p32_p0  ;;  %p470_p6 = por %p39_p4, %p38_p3 }
   0xc   : > { %p83_p7 = scmp.eq.s32.totalorder %s448_s13, 1  ;;  %p89_p8 = scmp.eq.s32.totalorder %s253_s14, 1 }
   0xd   : > { %p278_p10 = scmp.lt.s32.totalorder %s408_s12, 2  ;;  %s112_s23 = sand.u32 1, %s404_s11  }
   0xe   : > { %p477_p11 = por %p83_p7, %p32_p0  ;;  %p481_p12 = por %p89_p8, %p38_p3 }
   0xf   : > { %s257_s24 = sshll.u32 %s408_s12, 7  ;;  %s256_s25 = sshll.u32 %s112_s23, 3 }
  0x10   : > { %s597_s21 = scalar_select %p477_p11, 1, 0 }
  0x11   : > { %s598_s22 = scalar_select %p481_p12, 1, 0 }
  0x12   : > { %s490_s28 = scalar_lea.hbm %s591_s0, %s257_s24  ;;  %s116_s29 = scalar_lea.vmem [#allocation2], %s256_s25 }
  0x13   : > { %s123_s30 = sshll.u32 %s116_s29, 4  ;;  %p494_p13 = pnand %p278_p10, %p466_p5  ;;  %s498_s30 = int_to_ptr.vmem [resolvable:$true] %s123_s30 }
  0x14   : > { %s113_s4 = scalar_lea.sflag [#allocation3], %s112_s23  ;;  %s312_s5 = scalar_lea.hbm %s490_s28, 128 }
  0x15   : > { %p313_p2 = scmp.ne.s32.totalorder %s490_s28, %s312_s5  ;;  %p314_p3 = pneg %p494_p13 }
  0x16   : > { %s317_s8 = scalar_lea.hbm %s591_s0, 256  ;;  %p318_p5 = scmp.lt.u32.totalorder %s490_s28, %s591_s0 }
  0x17   : > { %p315_p4 = pnand %p314_p3, %p313_p2  ;;  %p319_p8 = scmp.lt.u32.totalorder %s317_s8, %s312_s5 }
  0x18   : > { %p321_p9 = scmp.lt.u32.totalorder %s312_s5, %s490_s28 }
  0x19   : > { %p316_p7 = pneg %p315_p4  ;;  %p320_p10 = por %p319_p8, %p318_p5 }
  0x1b   : > { %p322_p0 = por %p321_p9, %p320_p10 }
  0x1d   : > { %p323_p1 = pnand %p322_p0, %p316_p7 }
  0x1f   : > { %326 = shalt.err (!%p323_p1)
}
  0x20   : > { %s327_s17 = scalar_lea.vmem %s498_s30, 128  ;;  %s410_s19 = smov [#allocation2]  }
  0x21   : > { %p328_p2 = scmp.ne.s32.totalorder %s498_s30, %s327_s17  ;;  %s332_s23 = sshll.u32 %s410_s19, 4  ;;  %s333_s23 = int_to_ptr.vmem [resolvable:$false] %s332_s23 }
  0x22   : > { %s334_s24 = scalar_lea.vmem %s333_s23, 256  ;;  %p335_p11 = scmp.lt.s32.totalorder %s498_s30, %s333_s23 }
  0x23   : > { %p330_p4 = pnand %p328_p2, %p314_p3  ;;  %p336_p5 = scmp.lt.s32.totalorder %s334_s24, %s327_s17 }
  0x25   : > { %p331_p12 = pneg %p330_p4  ;;  %p337_p8 = por %p336_p5, %p335_p11 }
  0x27   : > { %p338_p9 = pnand %p337_p8, %p331_p12 }
  0x29   : > { %341 = shalt.err (!%p338_p9)
}
  0x2a   : > { %273 = dma.hbm_to_vmem [thread:$0]  (!%p494_p13), %s490_s28, 128, %s498_s30, %s113_s4  }
  0x2b   : > { %p600_p0 = scmp.lt.s32.totalorder %s408_s12, 3  ;;  %p601_p1 = scmp.ge.s32.totalorder %s408_s12, 1 }
  0x2d   : > { %p129_p3 = pnand %p601_p1, %p600_p0 }
  0x2e   : > { %s532_s25 = sand.u32 (!%p129_p3), 1, %s400_s10  }
  0x2f   : > { %132 = sbr.rel (%p129_p3) target bundleno = 81 (0x51), region = 28  ;;  %s259_s26 = sshll.u32 (!%p129_p3), %s532_s25, 3 }
  0x30   : > { %s135_s27 = scalar_lea.sflag (!%p129_p3), [#allocation3], %s532_s25  ;;  %s138_s29 = scalar_lea.vmem (!%p129_p3), [#allocation2], %s259_s26 }
  0x36   : > { %387 = dma.done.wait (%p470_p6), %s135_s27, 128  }
  0x37   : > { %389 = vsyncadd (%p470_p6), %s135_s27, 4294967168  ;;  %s158_s28 = scalar_lea.vmem [#allocation5], %s259_s26  ;;  %s263_s3 = sshll.u32 %s448_s13, 7  ;;  %v159_v0 = vld [vmem:[%s138_s29] sm:$0xff] }
  0x38   : > { %s183_s30 = sshll.u32 %s158_s28, 4  ;;  %v261_v1 = vld [vmem:[%s592_s1] ss:$0 sm:$0xff]  ;;  %s549_s20 = scalar_lea.hbm %s593_s2, %s263_s3  ;;  %s544_s30 = int_to_ptr.vmem [resolvable:$true] %s183_s30 }
  0x39   : > { %v167_v2 = vmul.f32 %v261_v1, %v159_v0  ;;  %s170_s8 = scalar_lea.sflag [#allocation4], %s532_s25  ;;  %s342_s14 = scalar_lea.vmem %s544_s30, 128 }
  0x3a   : > { %p343_p6 = scmp.ne.s32.totalorder %s544_s30, %s342_s14  ;;  %p602_p11 = scmp.ne.s32.totalorder %s597_s21, 0 }
  0x3b   : > { %168 = vst [vmem:[%s158_s28] sm:$0xff] %v167_v2  ;;  %s411_s13 = smov [#allocation5]  }
  0x3c   : > { %p344_p12 = pnand %p343_p6, %p602_p11  ;;  %s346_s16 = sshll.u32 %s411_s13, 4  ;;  %s347_s16 = int_to_ptr.vmem [resolvable:$false] %s346_s16 }
  0x3d   : > { %s348_s17 = scalar_lea.vmem %s347_s16, 256  ;;  %p349_p7 = scmp.lt.s32.totalorder %s544_s30, %s347_s16 }
  0x3e   : > { %p345_p13 = pneg %p344_p12  ;;  %p350_p10 = scmp.lt.s32.totalorder %s348_s17, %s342_s14 }
  0x40   : > { %p351_p2 = por %p350_p10, %p349_p7 }
  0x42   : > { %p352_p4 = pnand %p351_p2, %p345_p13 }
  0x44   : > { %355 = shalt.err (!%p352_p4)
}
  0x45   : > { %s356_s19 = scalar_lea.hbm %s549_s20, 128  ;;  %s360_s25 = scalar_lea.hbm %s593_s2, 256 }
  0x46   : > { %p357_p5 = scmp.ne.s32.totalorder %s549_s20, %s356_s19  ;;  %p361_p0 = scmp.lt.u32.totalorder %s549_s20, %s593_s2 }
  0x47   : > { %p362_p1 = scmp.lt.u32.totalorder %s360_s25, %s356_s19  ;;  %p364_p6 = scmp.lt.u32.totalorder %s356_s19, %s549_s20 }
  0x48   : > { %p358_p8 = pnand %p357_p5, %p602_p11 }
  0x49   : > { %p363_p3 = por %p362_p1, %p361_p0 }
  0x4a   : > { %p359_p9 = pneg %p358_p8 }
  0x4b   : > { %p365_p12 = por %p364_p6, %p363_p3 }
  0x4d   : > { %p366_p13 = pnand %p365_p12, %p359_p9 }
  0x4f   : > { %369 = shalt.err (!%p366_p13)
}
  0x50   : > { %268 = dma.vmem_to_hbm [thread:$0]  (%p602_p11), %s544_s30, 128, %s549_s20, %s170_s8  }
  0x51 PF: > { %s195_s29 = sand.u32 1, %s396_s9   ;;  %p603_p7 = scmp.ne.s32.totalorder %s598_s22, 0 }
  0x52   : > { %p604_p10 = scmp.ge.s32.totalorder %s408_s12, 2  ;;  %s196_s28 = scalar_lea.sflag [#allocation4], %s195_s29 }
  0x54   : > { %p275_p2 = pnand %p604_p10, %p603_p7 }
  0x56   : > { %391 = dma.done.wait (!%p275_p2), %s196_s28, 128  }
  0x57   : > { %393 = vsyncadd (!%p275_p2), %s196_s28, 4294967168  ;;  %p15_p4 = scmp.ge.s32.totalorder %s452_s15, 4   ;;  %s605_s9 = smov %s400_s10 }
  0x58   : > { %s606_s10 = smov %s404_s11  ;;  %s607_s11 = smov %s464_s18 }
  0x59   : > { %s608_s12 = smov %s452_s15  ;;  %17 = sbr.rel (!%p15_p4) target bundleno = 5 (0x5), region = 73 }
  0x60   :  { %201 = vsyncpa [#allocation3], 1 }
  0x61   :  { %203 = vsyncpa [#allocation3 + $0x1], 1 }
  0x62   :  { %204 = vsyncpa [#allocation4], 1 }
  0x63   :  { %206 = vsyncpa [#allocation4 + $0x1], 1 }

// kernel: fused_block_apply.1
= control target key start
LH: loop header
LB: loop body
LE: loop exit
PB: predicated region body
PF: predicated region fallthrough
CT: control target
= control target key end

     0   :  { %s426_s12 = smov 0   ;;  %s470_s0 = inlined_call_operand.vmem [shape: f32[32,64], index: 0, kind: input, shape index: {}]   ;;  %s471_s1 = inlined_call_operand.vmem [shape: f32[64,128], index: 1, kind: input, shape index: {}]   ;;  %s472_s2 = inlined_call_operand.vmem [shape: f32[1,128], index: 2, kind: input, shape index: {}]   ;;  %s473_s3 = inlined_call_operand.vmem [shape: f32[32,128], index: 3, kind: output, shape index: {}]  }
   0x1 LB: > { %s331_s13 = sadd.s32 4294967295, %s404_s12   ;;  %p335_p0 = scmp.ge.s32.totalorder %s404_s12, 1  ;;  %s404_s12 = sphi %s426_s12, %s13_s12  }
   0x2   : > { %p138_p1 = scmp.lt.s32.totalorder %s404_s12, 3 }
   0x4   : > { %p139_p2 = pnand %p335_p0, %p138_p1 }
   0x5   : > { %v176_v0 = vld [vmem:[%s471_s1] sm:$0xff] (!%p139_p2)  ;;  %v177_v1 = vld [vmem:[%s471_s1 + $0x8] sm:$0xff] (!%p139_p2)  ;;  %v178_v2 = vld [vmem:[%s471_s1 + $0x10] sm:$0xff] (!%p139_p2)  ;;  %s336_s20 = sshll.u32 (!%p139_p2), %s331_s13, 1  ;;  %vm191_vm0 = vcmask (!%p139_p2), 523264  }
   0x6   : > { %142 = sbr.rel (%p139_p2) target bundleno = 240 (0xf0), region = 32  ;;  %v374_v3 = vpack.c.bf16 (!%p139_p2), %v177_v1, %v176_v0  ;;  %v179_v4 = vld [vmem:[%s471_s1 + $0x18] sm:$0xff] (!%p139_p2)  ;;  %p163_p3 = scmp.lt.s32.totalorder (!%p139_p2), %s336_s20, 3  ;;  %v180_v6 = vld [vmem:[%s471_s1 + $0x20] sm:$0xff] (!%p139_p2)  ;;  %v181_v7 = vld [vmem:[%s471_s1 + $0x28] sm:$0xff] (!%p139_p2) }
   0x7   : > { %v378_v5 = vpack.c.bf16 (!%p139_p2), %v179_v4, %v178_v2  ;;  %v382_v8 = vpack.c.bf16 (!%p139_p2), %v181_v7, %v180_v6  ;;  %v182_v9 = vld [vmem:[%s471_s1 + $0x30] sm:$0xff] (!%p139_p2)  ;;  %v183_v10 = vld [vmem:[%s471_s1 + $0x38] sm:$0xff] (!%p139_p2)  ;;  %v340_v14 = vld [vmem:[%s472_s2] ss:$0 sm:$0xff] (!%p139_p2) }
   0x8   : > { %375 = vmatprep.subr.bf16.mxu0 (!%p139_p2), %v374_v3  ;;  %v386_v12 = vpack.c.bf16 (!%p139_p2), %v183_v10, %v182_v9 }
   0x9   : > { %377 = vmatpush3.bf16.msra.mxu0 (!%p139_p2), %v374_v3 }
   0xa   : > { %379 = vmatprep.subr.bf16.mxu0 (!%p139_p2), %v378_v5 }
   0xd   : > { %s475_s20 = smov (!%p163_p3, %s336_s20), 3  ;;  %381 = vmatpush3.bf16.msra.mxu0 %v378_v5 }
   0xe   : > { %s337_s27 = sshll.u32 %s475_s20, 3  ;;  %383 = vmatprep.subr.bf16.mxu0 %v382_v8 }
   0xf   : > { %s166_s7 = scalar_lea.vmem %s470_s0, %s337_s27  ;;  %s172_s13 = scalar_lea.vmem %s473_s3, %s337_s27 }
  0x10   : > { %v174_v11 = vld [vmem:[%s166_s7] sm:$0xff]  ;;  %v175_v13 = vld [vmem:[%s166_s7 + $0x8] sm:$0xff] }
  0x11   : > { %371 = vmatprep.mubr.msk.f32.mxu0 %vm191_vm0, %v174_v11  ;;  %385 = vmatpush3.bf16.msra.mxu0 %v382_v8 }
  0x12   : > { %387 = vmatprep.subr.bf16.mxu0 %v386_v12 }
  0x15   : > { %389 = vmatpush3.bf16.msra.mxu0 %v386_v12 }
  0x18   : > { %372 = vmatmul.mubr.msk.f32.vlgmr.msra.gmra.mrb[0].mxu0 %vm191_vm0, %v175_v13 }
  0xeb   : > { %v373_v15 = vpop.f32.mrb[0].mxu0 }
  0xec   : > { %v264_v16 = vpop.f32.mrb[1].mxu0  ;;  %v270_v18 = vadd.f32 %v373_v15, %v340_v14 }
  0xed   : > { %v265_v17 = vadd.f32 %v340_v14, %v264_v16 }
  0xee   : > { %274 = vst [vmem:[%s172_s13 + $0x8] sm:$0xff] %v270_v18 }
  0xef   : > { %273 = vst [vmem:[%s172_s13] sm:$0xff] %v265_v17 }
  0xf0 PF: > { %s13_s12 = sadd.s32 1, %s404_s12  }
  0xf1   : > { %p10_p4 = scmp.ge.s32.totalorder %s13_s12, 4  }
  0xf3   :  { %12 = sbr.rel (!%p10_p4) target bundleno = 1 (0x1), region = 62 }

</bundles_post_ra>
